<compile_context>
chip_gen: v6e
topology: v6e:2x2x1
jax: 0.10.0
libtpu: 0.0.40
codegen_flags: <defaults>
</compile_context>

<pallas_src>
import functools

import jax
import jax.numpy as jnp
from jax.experimental import pallas as pl
from jax.experimental.pallas import tpu as pltpu

ALPHA = 0.25
GAMMA = 2.0
NEG_BIG = -1e30  # masked-out value for the target-logit row max


def _round_up(x, m):
    return ((x + m - 1) // m) * m


def focal_loss_kernel(x_ref, t_ref, out_ref, acc_ref, *,
                      alpha, gamma, n_rows, block_n):
    i = pl.program_id(0)

    @pl.when(i == 0)
    def _init():
        acc_ref[...] = jnp.zeros_like(acc_ref)

    # Per-tile cast to f32 (inputs stream in native dtype).
    xf = x_ref[...].astype(jnp.float32)              # (TN, C)
    t = t_ref[...]                                   # (TN, 1) int32

    # Row-wise softmax pieces (single full-tile exp).
    m = jnp.max(xf, axis=-1, keepdims=True)          # (TN, 1)
    p = jnp.exp(xf - m)                               # (TN, C)
    sum_p = jnp.sum(p, axis=-1, keepdims=True)        # (TN, 1)

    # Target logit via a masked row-max (no float one-hot, no extra multiply).
    col = jax.lax.broadcasted_iota(jnp.int32, (1, xf.shape[1]), 1)   # (1, C)
    tgt_logit = jnp.max(jnp.where(col == t, xf, NEG_BIG),
                        axis=-1, keepdims=True)        # (TN, 1)

    # cross entropy (reduction='none') and pt = softmax(x)[target]
    ce = jnp.log(sum_p) + m - tgt_logit               # (TN, 1)
    pt = jnp.exp(tgt_logit - m) / sum_p                # (TN, 1), in [0, 1]
    w = 1.0 - pt

    # focal weight without a float pow (EUP transcendental + NaN hazard)
    if gamma == 2.0:
        fw = w * w
    elif float(gamma).is_integer():
        fw = jax.lax.integer_pow(w, int(gamma))
    else:
        fw = jnp.power(jnp.maximum(w, 0.0), gamma)

    fl = alpha * fw * ce                               # (TN, 1)

    # Ragged-tail row mask: only emitted when N % tn != 0 (keeps the mean
    # divisor exactly N and discards garbage/NaN from out-of-bounds rows).
    if n_rows % block_n != 0:
        row = jax.lax.broadcasted_iota(jnp.int32, fl.shape, 0) + i * block_n
        fl = jnp.where(row < n_rows, fl, 0.0)

    # Elementwise (VPU-only) accumulation; cross-sublane reduce deferred.
    acc_ref[...] += fl

    @pl.when(i == pl.num_programs(0) - 1)
    def _finalize():
        out_ref[...] = jnp.sum(acc_ref[...], keepdims=True) * jnp.float32(1.0 / n_rows)


def focal_loss(logits, targets, alpha=ALPHA, gamma=GAMMA):
    n, c = logits.shape

    # Size the row tile so the logits block is ~4 MiB (f32-equivalent).
    # VMEM budget per step: 2x double-buffered input block (native dtype)
    # + ~3 live f32 full-tile temporaries -> ~20 MiB worst case, under the
    # 32 MiB default scoped limit on every generation (v5e/v6e/v7x).
    target_bytes = 4 * 1024 * 1024
    tn = (target_bytes // (4 * c)) // 8 * 8
    tn = max(8, min(4096, tn))
    tn = min(tn, _round_up(n, 8))
    grid = pl.cdiv(n, tn)

    t = targets.astype(jnp.int32).reshape(n, 1)

    kern = functools.partial(
        focal_loss_kernel,
        alpha=float(alpha), gamma=float(gamma), n_rows=int(n), block_n=int(tn),
    )

    out = pl.pallas_call(
        kern,
        out_shape=jax.ShapeDtypeStruct((1, 1), jnp.float32),
        grid=(grid,),
        in_specs=[
            pl.BlockSpec((tn, c), lambda i: (i, 0)),   # class dim = full extent
            pl.BlockSpec((tn, 1), lambda i: (i, 0)),
        ],
        out_specs=pl.BlockSpec((1, 1), lambda i: (0, 0)),
        scratch_shapes=[pltpu.VMEM((tn, 1), jnp.float32)],
        compiler_params=pltpu.CompilerParams(
            dimension_semantics=("arbitrary",),
        ),
    )(logits, t)
    return out[0, 0]


def _focal_loss_reference(logits, targets, alpha=ALPHA, gamma=GAMMA):
    x = logits.astype(jnp.float32)
    lse = jax.scipy.special.logsumexp(x, axis=-1)
    tgt = jnp.take_along_axis(x, targets.astype(jnp.int32)[:, None], axis=-1)[:, 0]
    ce = lse - tgt
    pt = jnp.exp(-ce)
    return jnp.mean(alpha * (1.0 - pt) ** gamma * ce)


if __name__ == "__main__":
    key = jax.random.PRNGKey(0)
    k1, k2 = jax.random.split(key)
    N, C = 16, 32
    logits = jax.random.normal(k1, (N, C), dtype=jnp.float32)
    targets = jax.random.randint(k2, (N,), 0, C, dtype=jnp.int32)

    loss = focal_loss(logits, targets)
    jax.block_until_ready(loss)

    ref = _focal_loss_reference(logits, targets)
    assert jnp.allclose(loss, ref, rtol=1e-4, atol=1e-5), (loss, ref)
    print("KERNEL_OK")
</pallas_src>

<mosaic_0001>
module attributes {stable_mosaic.version = 11 : i64} {
  func.func @focal_loss_kernel(%arg0: i32, %arg1: memref<16x32xf32, #tpu.memory_space<vmem>>, %arg2: memref<16x1xi32, #tpu.memory_space<vmem>>, %arg3: memref<1x1xf32, #tpu.memory_space<vmem>>, %arg4: memref<16x1xf32, #tpu.memory_space<vmem>>) attributes {dimension_semantics = [#tpu.dimension_semantics<arbitrary>], iteration_bounds = array<i64: 1>, scalar_prefetch = 0 : i64, scratch_operands = 1 : i64, tpu.core_type = #tpu.core_type<tc>, window_params = [{transform_indices = @transform_0, window_bounds = array<i64: 16, 32>}, {transform_indices = @transform_1, window_bounds = array<i64: 16, 1>}, {pipeline_mode = #tpu.pipeline_mode<synchronous>, transform_indices = @transform_2, window_bounds = array<i64: 1, 1>}]} {
    %c0_i32 = arith.constant 0 : i32
    %0 = arith.cmpi eq, %arg0, %c0_i32 : i32
    %1 = arith.extui %0 : i1 to i32
    %c0_i32_0 = arith.constant 0 : i32
    %2 = arith.cmpi ne, %1, %c0_i32_0 : i32
    scf.if %2 {
      %cst_15 = arith.constant 0.000000e+00 : f32
      %38 = vector.broadcast %cst_15 : f32 to vector<16x1xf32>
      %c0_16 = arith.constant 0 : index
      %c0_17 = arith.constant 0 : index
      %39 = vector.load %arg4[%c0_16, %c0_17] : memref<16x1xf32, #tpu.memory_space<vmem>>, vector<16x1xf32>
      tpu.vector_store %arg4[%c0_16, %c0_17], %38 {strides = array<i32>} : memref<16x1xf32, #tpu.memory_space<vmem>>, vector<16x1xf32>,
    } else {
    }
    %c0 = arith.constant 0 : index
    %c0_1 = arith.constant 0 : index
    %3 = vector.load %arg1[%c0, %c0_1] : memref<16x32xf32, #tpu.memory_space<vmem>>, vector<16x32xf32>
    %c0_2 = arith.constant 0 : index
    %c0_3 = arith.constant 0 : index
    %4 = vector.load %arg2[%c0_2, %c0_3] : memref<16x1xi32, #tpu.memory_space<vmem>>, vector<16x1xi32>
    %cst = arith.constant dense<0xFF800000> : vector<16xf32>
    %5 = vector.multi_reduction <maximumf>, %3, %cst [1] : vector<16x32xf32> to vector<16xf32>
    %6 = vector.shape_cast %5 : vector<16xf32> to vector<16x1xf32>
    %7 = vector.broadcast %6 : vector<16x1xf32> to vector<16x32xf32>
    %8 = arith.subf %3, %7 : vector<16x32xf32>
    %9 = math.exp %8 : vector<16x32xf32>
    %cst_4 = arith.constant dense<0.000000e+00> : vector<16xf32>
    %10 = vector.multi_reduction <add>, %9, %cst_4 [1] : vector<16x32xf32> to vector<16xf32>
    %11 = vector.shape_cast %10 : vector<16xf32> to vector<16x1xf32>
    %12 = tpu.iota {dimensions = array<i32: 1>} : vector<1x32xi32>
    %13 = vector.broadcast %12 : vector<1x32xi32> to vector<16x32xi32>
    %14 = vector.broadcast %4 : vector<16x1xi32> to vector<16x32xi32>
    %15 = arith.cmpi eq, %13, %14 : vector<16x32xi32>
    %cst_5 = arith.constant -1.000000e+30 : f32
    %16 = vector.broadcast %cst_5 : f32 to vector<16x32xf32>
    %17 = arith.select %15, %3, %16 : vector<16x32xi1>, vector<16x32xf32>
    %cst_6 = arith.constant dense<0xFF800000> : vector<16xf32>
    %18 = vector.multi_reduction <maximumf>, %17, %cst_6 [1] : vector<16x32xf32> to vector<16xf32>
    %19 = vector.shape_cast %18 : vector<16xf32> to vector<16x1xf32>
    %20 = math.log %11 : vector<16x1xf32>
    %21 = arith.addf %20, %6 : vector<16x1xf32>
    %22 = arith.subf %21, %19 : vector<16x1xf32>
    %23 = arith.subf %19, %6 : vector<16x1xf32>
    %24 = math.exp %23 : vector<16x1xf32>
    %25 = arith.divf %24, %11 : vector<16x1xf32>
    %cst_7 = arith.constant 1.000000e+00 : f32
    %26 = vector.broadcast %cst_7 : f32 to vector<16x1xf32>
    %27 = arith.subf %26, %25 : vector<16x1xf32>
    %28 = arith.mulf %27, %27 : vector<16x1xf32>
    %cst_8 = arith.constant 2.500000e-01 : f32
    %29 = vector.broadcast %cst_8 : f32 to vector<16x1xf32>
    %30 = arith.mulf %29, %28 : vector<16x1xf32>
    %31 = arith.mulf %30, %22 : vector<16x1xf32>
    %c0_9 = arith.constant 0 : index
    %c0_10 = arith.constant 0 : index
    %32 = vector.load %arg4[%c0_9, %c0_10] : memref<16x1xf32, #tpu.memory_space<vmem>>, vector<16x1xf32>
    %33 = arith.addf %32, %31 : vector<16x1xf32>
    %c0_11 = arith.constant 0 : index
    %c0_12 = arith.constant 0 : index
    %34 = vector.load %arg4[%c0_11, %c0_12] : memref<16x1xf32, #tpu.memory_space<vmem>>, vector<16x1xf32>
    tpu.vector_store %arg4[%c0_11, %c0_12], %33 {strides = array<i32>} : memref<16x1xf32, #tpu.memory_space<vmem>>, vector<16x1xf32>,
    %c0_i32_13 = arith.constant 0 : i32
    %35 = arith.cmpi eq, %arg0, %c0_i32_13 : i32
    %36 = arith.extui %35 : i1 to i32
    %c0_i32_14 = arith.constant 0 : i32
    %37 = arith.cmpi ne, %36, %c0_i32_14 : i32
    scf.if %37 {
      %c0_15 = arith.constant 0 : index
      %c0_16 = arith.constant 0 : index
      %38 = vector.load %arg4[%c0_15, %c0_16] : memref<16x1xf32, #tpu.memory_space<vmem>>, vector<16x1xf32>
      %39 = vector.shape_cast %38 : vector<16x1xf32> to vector<1x16x1xf32>
      %cst_17 = arith.constant dense<0.000000e+00> : vector<1xf32>
      %40 = vector.multi_reduction <add>, %39, %cst_17 [1, 2] : vector<1x16x1xf32> to vector<1xf32>
      %41 = vector.shape_cast %40 : vector<1xf32> to vector<1x1x1xf32>
      %42 = vector.extract %41[0, 0, 0] : f32 from vector<1x1x1xf32>
      %43 = vector.broadcast %42 : f32 to vector<1x1xf32>
      %cst_18 = arith.constant 6.250000e-02 : f32
      %44 = vector.broadcast %cst_18 : f32 to vector<1x1xf32>
      %45 = arith.mulf %43, %44 : vector<1x1xf32>
      %c0_19 = arith.constant 0 : index
      %c0_20 = arith.constant 0 : index
      %46 = vector.load %arg3[%c0_19, %c0_20] : memref<1x1xf32, #tpu.memory_space<vmem>>, vector<1x1xf32>
      tpu.vector_store %arg3[%c0_19, %c0_20], %45 {strides = array<i32>} : memref<1x1xf32, #tpu.memory_space<vmem>>, vector<1x1xf32>,
    } else {
    }
    return
  }
  func.func @transform_0(%arg0: i32) -> (i32, i32) {
    %c0_i32 = arith.constant 0 : i32
    %c0_i32_0 = arith.constant 0 : i32
    return %arg0, %c0_i32 : i32, i32
  }
  func.func @transform_1(%arg0: i32) -> (i32, i32) {
    %c0_i32 = arith.constant 0 : i32
    %c0_i32_0 = arith.constant 0 : i32
    return %arg0, %c0_i32 : i32, i32
  }
  func.func @transform_2(%arg0: i32) -> (i32, i32) {
    %c0_i32 = arith.constant 0 : i32
    %c0_i32_0 = arith.constant 0 : i32
    %c0_i32_1 = arith.constant 0 : i32
    return %c0_i32, %c0_i32_0 : i32, i32
  }
}

</mosaic_0001>

<bundles_post_ra>
// kernel: tpu_custom_call.1
= control target key start
LH: loop header
LB: loop body
LE: loop exit
PB: predicated region body
PF: predicated region fallthrough
CT: control target
= control target key end

     0   :  { %vm23_vm0 = vcmask 261120   ;;  %v173_v2 = vmov 0   ;;  %s218_s0 = inlined_call_operand.vmem [shape: f32[16,32], index: 0, kind: input, shape index: {}]   ;;  %s219_s1 = inlined_call_operand.vmem [shape: s32[16,1], index: 1, kind: input, shape index: {}]   ;;  %s220_s2 = inlined_call_operand.hbm [shape: f32[1,1], index: 2, kind: output, shape index: {}]  }
   0x1   :  { %v21_v0 = vld [vmem:[%s219_s1] sm:$0xff]  ;;  %133 = vset.pattern.permute.xlu1 %v173_v2  ;;  %v20_v4 = vld [vmem:[%s218_s0 + $0x8] sm:$0xff]  ;;  %134 = vset.pattern.permute.xlu0 %v173_v2 }
   0x2   :  { %v19_v1 = vld [vmem:[%s218_s0] sm:$0xff] }
   0x3   :  { %v24_v3 = vsel %vm23_vm0, %v19_v1, -inf }
   0x4   :  { %7 = vsyncpa [#allocation4], 0  ;;  %45 = vperm.xlu1 %133, %v21_v0   ;;  %25 = vmax.xlane.f32.xlu0 %v24_v3  ;;  %v22_v5 = vld [vmem:[%s219_s1 + $0x8] sm:$0xff]  ;;  %v27_v6 = vsel %vm23_vm0, %v20_v4, -inf  ;;  %v42_v7 = vlaneseq  ;;  %vm16_vm3 = vcmask 7168   ;;  %v174_v25 = vmov 0.0  }
   0x5   :  { %17 = vst.msk [vmem:[#allocation2] sm:$0xff] %vm16_vm3, %v174_v25  ;;  %18 = vst.msk [vmem:[#allocation2 + $0x8] sm:$0xff] %vm16_vm3, %v174_v25  ;;  %s175_s0 = smov [#allocation3]   ;;  %vm112_vm4 = vcmask 0  }
   0x6   :  { %v43_v8 = vand.u32 127, %v42_v7  ;;  %s120_s1 = sshll.u32 %s175_s0, 4  ;;  %s121_s1 = int_to_ptr.vmem [resolvable:$true] %s120_s1 }
   0x7   :  { %s151_s18 = scalar_lea.vmem %s121_s1, 16  ;;  %s155_s19 = scalar_lea.vmem %s121_s1, 32 }
   0x8   :  { %48 = vperm.xlu1 %133, %v22_v5   ;;  %28 = vmax.xlane.f32.xlu0 %v27_v6  ;;  %p152_p0 = scmp.ne.s32.totalorder %s121_s1, %s151_s18  ;;  %p156_p1 = scmp.lt.s32.totalorder %s121_s1, %s121_s1 }
   0x9   :  { %p157_p2 = scmp.lt.s32.totalorder %s155_s19, %s151_s18 }
   0xb   :  { %p158_p3 = por %p157_p2, %p156_p1 }
   0xc   :  { %v86_v51 = vld [vmem:[#allocation2] sm:$0xff]  ;;  %v87_v57 = vld [vmem:[#allocation2 + $0x8] sm:$0xff] }
   0xd   :  { %p159_p4 = pnand %p158_p3, %p152_p0 }
  0x7f   :  { %v46_v9 = vpop.permute.xlu1 %45 }
  0x80   :  { %vm50_vm1 = vcmp.eq.s32.totalorder %v43_v8, %v46_v9 }
  0x81   :  { %v52_v10 = vsel %vm50_vm1, %v19_v1, -1e+30 }
  0x82   :  { %v54_v11 = vsel %vm23_vm0, %v52_v10, -inf }
  0x83   :  { %v49_v12 = vpop.permute.xlu1 %48  ;;  %55 = vmax.xlane.f32.xlu0 %v54_v11 }
  0x84   :  { %vm51_vm2 = vcmp.eq.s32.totalorder %v43_v8, %v49_v12 }
  0x85   :  { %v53_v13 = vsel %vm51_vm2, %v20_v4, -1e+30 }
  0x86   :  { %v57_v14 = vsel %vm23_vm0, %v53_v13, -inf }
  0x87   :  { %58 = vmax.xlane.f32.xlu1 %v57_v14 }
  0x8d   :  { %v26_v15 = vpop.xlane.xlu0 %25 }
  0x8e   :  { %v30_v16 = vsub.f32 %v19_v1, %v26_v15 }
  0x90   :  { %v32_v17 = vmul.f32 1.442695, %v30_v16 }
  0x91   :  { %v29_v18 = vpop.xlane.xlu0 %28 }
  0x92   :  { %135 = vpow2.f32 %v32_v17  ;;  %v31_v19 = vsub.f32 %v20_v4, %v29_v18 }
  0x94   :  { %v34_v20 = vmul.f32 1.442695, %v31_v19 }
  0x96   :  { %137 = vpow2.f32 %v34_v20 }
  0x9f   :  { %v136_v21 = vpop.eup %135 }
  0xa0   :  { %v36_v22 = vsel %vm23_vm0, %v136_v21, 0.0 }
  0xa1   :  { %37 = vadd.xlane.f32.xlu0 %v36_v22 }
  0xa3   :  { %v138_v23 = vpop.eup %137 }
  0xa4   :  { %v39_v24 = vsel %vm23_vm0, %v138_v23, 0.0 }
  0xa5   :  { %40 = vadd.xlane.f32.xlu0 %v39_v24 }
 0x10c   :  { %v56_v26 = vpop.xlane.xlu0 %55 }
 0x10d   :  { %v68_v27 = vsub.f32 %v56_v26, %v26_v15 }
 0x10f   :  { %v70_v29 = vmul.f32 1.442695, %v68_v27 }
 0x110   :  { %v59_v28 = vpop.xlane.xlu1 %58 }
 0x111   :  { %v69_v30 = vsub.f32 %v59_v28, %v29_v18  ;;  %139 = vpow2.f32 %v70_v29 }
 0x113   :  { %v72_v31 = vmul.f32 1.442695, %v69_v30 }
 0x11e   :  { %v140_v34 = vpop.eup %139 }
 0x12a   :  { %v38_v32 = vpop.xlane.xlu0 %37 }
 0x12b   :  { %141 = vlog2.f32 %v38_v32 }
 0x12c   :  { %143 = vrcp.f32 %v38_v32 }
 0x12d   :  { %145 = vpow2.f32 %v72_v31 }
 0x12e   :  { %v41_v33 = vpop.xlane.xlu0 %40 }
 0x12f   :  { %147 = vlog2.f32 %v41_v33 }
 0x130   :  { %149 = vrcp.f32 %v41_v33 }
 0x138   :  { %v142_v35 = vpop.eup %141 }
 0x139   :  { %v144_v36 = vpop.eup %143  ;;  %v61_v37 = vmul.f32 0.6931472, %v142_v35 }
 0x13a   :  { %v75_v38 = vmul.f32 %v144_v36, %v140_v34  ;;  %v146_v39 = vpop.eup %145 }
 0x13b   :  { %v64_v41 = vadd.f32 %v61_v37, %v26_v15 }
 0x13c   :  { %v148_v40 = vpop.eup %147  ;;  %v78_v42 = vsub.f32 1.0, %v75_v38 }
 0x13d   :  { %v150_v43 = vpop.eup %149  ;;  %v63_v44 = vmul.f32 0.6931472, %v148_v40  ;;  %v66_v47 = vsub.f32 %v64_v41, %v56_v26 }
 0x13e   :  { %v80_v45 = vmul.f32 %v78_v42, %v78_v42  ;;  %v77_v46 = vmul.f32 %v150_v43, %v146_v39 }
 0x13f   :  { %v65_v49 = vadd.f32 %v63_v44, %v29_v18 }
 0x140   :  { %v82_v48 = vmul.f32 0.25, %v80_v45  ;;  %v79_v50 = vsub.f32 1.0, %v77_v46 }
 0x141   :  { %v67_v54 = vsub.f32 %v65_v49, %v59_v28 }
 0x142   :  { %v84_v52 = vmul.f32 %v82_v48, %v66_v47  ;;  %v81_v53 = vmul.f32 %v79_v50, %v79_v50 }
 0x144   :  { %v83_v55 = vmul.f32 0.25, %v81_v53  ;;  %v88_v56 = vadd.f32 %v86_v51, %v84_v52 }
 0x146   :  { %v85_v58 = vmul.f32 %v83_v55, %v67_v54  ;;  %91 = vst.msk [vmem:[#allocation2] sm:$0xff] %vm16_vm3, %v88_v56 }
 0x148   :  { %v89_v59 = vadd.f32 %v87_v57, %v85_v58 }
 0x14a   :  { %92 = vst.msk [vmem:[#allocation2 + $0x8] sm:$0xff] %vm16_vm3, %v89_v59 }
 0x14d   :  { %v96_v60 = vld [vmem:[#allocation2] sm:$0xff] }
 0x14e   :  { %v98_v62 = vsel %vm16_vm3, %v96_v60, 0.0 }
 0x151   :  { %v97_v61 = vld [vmem:[#allocation2 + $0x8] sm:$0xff] }
 0x152   :  { %v99_v63 = vsel %vm16_vm3, %v97_v61, 0.0 }
 0x153   :  { %v100_v0 = vadd.f32 %v99_v63, %v98_v62 }
 0x155   :  { %101 = vadd.xlane.f32.xlu0 %v100_v0 }
 0x1de   :  { %v102_v1 = vpop.xlane.xlu0 %101 }
 0x1df   :  { %v103_v2 = vrot.slane %v102_v1, 4 }
 0x1e1   :  { %v104_v3 = vadd.f32 %v103_v2, %v102_v1 }
 0x1e3   :  { %v105_v4 = vrot.slane %v104_v3, 2 }
 0x1e5   :  { %v106_v5 = vadd.f32 %v105_v4, %v104_v3 }
 0x1e7   :  { %v107_v6 = vrot.slane %v106_v5, 1 }
 0x1e9   :  { %v108_v7 = vadd.f32 %v107_v6, %v106_v5 }
 0x1eb   :  { %128 = vpush %v108_v7 }
 0x21c   :  { %s129_s17 = spop %128 }
 0x21d   :  { %v110_v8 = vstv %s129_s17 }
 0x21e   :  { %v111_v9 = vmul.f32 0.0625, %v110_v8 }
 0x220   :  { %113 = vst.msk [vmem:[#allocation3] sm:$0x1] %vm112_vm4, %v111_v9 }
 0x221   :  { %162 = shalt.err (!%p159_p4)
}
 0x222   :  { %123 = dma.vmem_to_hbm [thread:$0]  %s121_s1, 16, %s220_s2, [#allocation4]  }
 0x223   :  { %171 = dma.done.wait [#allocation4], 16  }
 0x224   :  { %172 = vsyncadd [#allocation4], 4294967280 }
 0x225   :  { %127 = vsyncpa [#allocation4], 1 }

</bundles_post_ra>
